<compile_context>
chip_gen: v7x
topology: tpu7x:2x2x1
jax: 0.10.0
libtpu: 0.0.40
codegen_flags: <defaults>
</compile_context>

<pallas_src>
import functools

import numpy as np
import jax
import jax.numpy as jnp
from jax import lax
from jax.experimental import pallas as pl
from jax.experimental.pallas import tpu as pltpu

_EPS = 1e-5  # torch BatchNorm2d default


# ----------------------------------------------------------------------------
# Fused kernel (channel-major): relu -> conv1 (both branches, one matmul) -> BN1
#   -> relu -> conv2 (one matmul per branch) -> BN2 (x0.5 folded) -> sum + identity.
# One grid step processes b_tile images.
# ----------------------------------------------------------------------------
def _shake_block_kernel(x_ref, m_ref, w1_ref, s1_ref, b1_ref, w2_ref, s2_ref,
                        b2_ref, o_ref, p1_ref, p2a_ref, p2b_ref,
                        *, H, W, Cin, Cout, b_tile):
    HW = H * W

    # Hoisted once per grid step: weights, folded BN vectors, per-tap boundary masks.
    w1 = w1_ref[...]                                   # (2*Cout, 9*Cin)   bf16
    w2 = w2_ref[...]                                   # (2*Cout, 9*Cout)  bf16
    s1 = s1_ref[...]                                   # (2*Cout, 1)       f32
    b1 = b1_ref[...]                                   # (2*Cout, 1)       f32
    s2 = s2_ref[...]                                   # (2*Cout, 1)       f32 (0.5 folded)
    b2 = b2_ref[...]                                   # (Cout, 1)         f32 (both branches)
    mxu = w1.dtype
    masks = [m_ref[pl.ds(t, 1), :] for t in range(9)]  # 9 x (1, HW) 0/1 masks

    def build_patches(act, p_ref, c):
        # act: (c, HW) f32, lane-dense.  Writes the (9*c, HW) im2col matrix of a 3x3
        # SAME conv: row block t = dy*3+dx holds act shifted by (dy-1, dx-1) with the
        # image border zeroed by the precomputed mask.  Lane shifts use the XLU
        # (pltpu.roll), masking is a cheap VPU multiply; every row block of the
        # scratch is overwritten, so no zeroing is ever needed.
        for dy in range(3):
            for dx in range(3):
                t = dy * 3 + dx
                off = (dy - 1) * W + (dx - 1)
                tap = act if off == 0 else pltpu.roll(act, shift=(-off) % HW, axis=1)
                if t != 4:                              # center tap is always in-bounds
                    tap = tap * masks[t]
                p_ref[pl.ds(t * c, c), :] = tap.astype(p_ref.dtype)

    for b in range(b_tile):
        x = x_ref[b].astype(jnp.float32)                # (Cin, HW) NCHW-flat, lane-dense
        rx = jnp.maximum(x, 0.0)                        # relu(x), shared by both branches

        # conv1 for BOTH branches in one matmul: (2*Cout, 9*Cin) @ (9*Cin, HW).
        build_patches(rx, p1_ref, Cin)
        h = jnp.dot(w1, p1_ref[...].astype(mxu),
                    preferred_element_type=jnp.float32)               # (2*Cout, HW)
        h = jnp.maximum(h * s1 + b1, 0.0)                             # BN1 + ReLU

        # conv2 per branch (no half-zero K): (Cout, 9*Cout) @ (9*Cout, HW).
        build_patches(h[:Cout], p2a_ref, Cout)
        build_patches(h[Cout:], p2b_ref, Cout)
        g1 = jnp.dot(w2[:Cout], p2a_ref[...].astype(mxu),
                     preferred_element_type=jnp.float32)              # (Cout, HW)
        g2 = jnp.dot(w2[Cout:], p2b_ref[...].astype(mxu),
                     preferred_element_type=jnp.float32)              # (Cout, HW)

        # BN2 (eval-mode ShakeShake 0.5 folded into s2/b2) + branch sum + identity.
        y = g1 * s2[:Cout] + g2 * s2[Cout:] + b2 + x                  # (Cout, HW)
        o_ref[b] = y.astype(o_ref.dtype)               # lane-dense store, no transpose


# ----------------------------------------------------------------------------
# One-time parameter preparation (weight re-layout + BN / alpha folding).
# ----------------------------------------------------------------------------
def _fold_bn(bn):
    scale = bn["gamma"] / jnp.sqrt(bn["var"] + _EPS)
    bias = bn["beta"] - bn["mean"] * scale
    return scale, bias


def _w_to_rowmajor(w_oihw):
    # (Cout, Cin, 3, 3) -> (Cout, 3, 3, Cin) -> (Cout, 9*Cin); col = (dy*3+dx)*Cin + ci
    cout, cin = w_oihw.shape[0], w_oihw.shape[1]
    return jnp.transpose(w_oihw, (0, 2, 3, 1)).reshape(cout, 9 * cin)


def prepare_params(params, mxu_dtype=jnp.bfloat16):
    br1, br2 = params["branch1"], params["branch2"]

    # conv weights: both branches stacked along the output-channel (row) axis.
    w1 = jnp.concatenate([_w_to_rowmajor(br1["w1"]), _w_to_rowmajor(br2["w1"])], axis=0)
    w2 = jnp.concatenate([_w_to_rowmajor(br1["w2"]), _w_to_rowmajor(br2["w2"])], axis=0)

    s1a, o1a = _fold_bn(br1["bn1"]); s1b, o1b = _fold_bn(br2["bn1"])
    s2a, o2a = _fold_bn(br1["bn2"]); s2b, o2b = _fold_bn(br2["bn2"])

    col = lambda v: v.reshape(-1, 1).astype(jnp.float32)     # channel-major (ch, 1)
    return {
        "w1": w1.astype(mxu_dtype),                          # (2*Cout, 9*Cin)
        "w2": w2.astype(mxu_dtype),                          # (2*Cout, 9*Cout)
        "s1": col(jnp.concatenate([s1a, s1b])),              # (2*Cout, 1)
        "b1": col(jnp.concatenate([o1a, o1b])),              # (2*Cout, 1)
        # eval-mode ShakeShake alpha = 0.5 folded into BN2 scale; both biases summed:
        "s2": col(0.5 * jnp.concatenate([s2a, s2b])),        # (2*Cout, 1)
        "b2": col(0.5 * (o2a + o2b)),                        # (Cout, 1)
    }


# ----------------------------------------------------------------------------
# Wrapper
# ----------------------------------------------------------------------------
def _tap_masks(H, W):
    """(9, H*W) 0/1 masks: tap (dy,dx) is valid iff (y+dy-1, x+dx-1) is in-bounds."""
    y = np.arange(H)[:, None]
    x = np.arange(W)[None, :]
    masks = []
    for dy in range(3):
        for dx in range(3):
            ok = ((y + dy - 1 >= 0) & (y + dy - 1 < H) &
                  (x + dx - 1 >= 0) & (x + dx - 1 < W))
            masks.append(ok.reshape(-1))
    return np.stack(masks).astype(np.float32)


def _patch_dtype(c, mxu_dtype):
    # bf16 scratches halve the dominant patch-build store/load traffic, but packed
    # (16-row) bf16 tiles need 16-row-aligned tap blocks; fall back to f32 otherwise.
    return mxu_dtype if c % 16 == 0 else jnp.float32


def _pick_b_tile(n, c, hw, itemsize):
    """Images per grid step: amortize per-step overhead, keep >= 2 grid steps for
    v7x's 2 TensorCores, and keep the double-buffered I/O blocks small."""
    budget = 4 << 20
    best = 1
    for bt in range(1, n + 1):
        if n % bt:
            continue
        if n // bt < min(2, n):
            continue
        if 4 * bt * c * hw * itemsize > budget:   # (in + out) x double-buffer
            continue
        best = bt
    return best


@jax.jit
def shake_block_forward(prepped, x_nchw):
    """NCHW in -> NCHW out, matching the PyTorch module (eval mode, equal_io)."""
    N, C, H, W = x_nchw.shape
    HW = H * W
    cout = prepped["w1"].shape[0] // 2
    assert cout == C, "only the equal_io (identity shortcut) path is implemented"

    x_flat = x_nchw.reshape(N, C, HW)                 # free reshape, no transpose
    masks = jnp.asarray(_tap_masks(H, W))             # (9, HW) compile-time constant
    b_tile = _pick_b_tile(N, C, HW, x_nchw.dtype.itemsize)
    grid = (N // b_tile,)

    kernel = functools.partial(_shake_block_kernel, H=H, W=W, Cin=C, Cout=cout,
                               b_tile=b_tile)
    full = lambda a: pl.BlockSpec(a.shape, lambda n: (0,) * a.ndim)
    mxu_dtype = prepped["w1"].dtype

    out = pl.pallas_call(
        kernel,
        out_shape=jax.ShapeDtypeStruct((N, cout, HW), x_nchw.dtype),
        grid=grid,
        in_specs=[
            pl.BlockSpec((b_tile, C, HW), lambda n: (n, 0, 0)),
            full(masks),
            full(prepped["w1"]), full(prepped["s1"]), full(prepped["b1"]),
            full(prepped["w2"]), full(prepped["s2"]), full(prepped["b2"]),
        ],
        out_specs=pl.BlockSpec((b_tile, cout, HW), lambda n: (n, 0, 0)),
        scratch_shapes=[
            pltpu.VMEM((9 * C, HW), _patch_dtype(C, mxu_dtype)),        # conv1 patches
            pltpu.VMEM((9 * cout, HW), _patch_dtype(cout, mxu_dtype)),  # conv2 branch1
            pltpu.VMEM((9 * cout, HW), _patch_dtype(cout, mxu_dtype)),  # conv2 branch2
        ],
        compiler_params=pltpu.CompilerParams(dimension_semantics=("parallel",)),
    )(x_flat, masks, prepped["w1"], prepped["s1"], prepped["b1"],
      prepped["w2"], prepped["s2"], prepped["b2"])
    return out.reshape(N, cout, H, W)                 # free reshape (already NCHW-flat)


# ----------------------------------------------------------------------------
# Synthetic parameter init (deterministic)
# ----------------------------------------------------------------------------
def _bn_params(key, ch):
    k1, k2, k3, k4 = jax.random.split(key, 4)
    return {
        "gamma": 0.8 + 0.4 * jax.random.uniform(k1, (ch,), jnp.float32),
        "beta": 0.1 * jax.random.normal(k2, (ch,), jnp.float32),
        "mean": 0.1 * jax.random.normal(k3, (ch,), jnp.float32),
        "var": 0.5 + jax.random.uniform(k4, (ch,), jnp.float32),
    }


def _init_branch(key, in_ch, out_ch):
    k1, k2, k3, k4 = jax.random.split(key, 4)
    std1 = float(np.sqrt(2.0 / (in_ch * 9)))
    std2 = float(np.sqrt(2.0 / (out_ch * 9)))
    return {
        "w1": std1 * jax.random.normal(k1, (out_ch, in_ch, 3, 3), jnp.float32),
        "bn1": _bn_params(k2, out_ch),
        "w2": std2 * jax.random.normal(k3, (out_ch, out_ch, 3, 3), jnp.float32),
        "bn2": _bn_params(k4, out_ch),
    }


def init_shake_block_params(key, in_ch, out_ch):
    kb1, kb2 = jax.random.split(key)
    return {"branch1": _init_branch(kb1, in_ch, out_ch),
            "branch2": _init_branch(kb2, in_ch, out_ch)}


# ----------------------------------------------------------------------------
# Pure-JAX references
#   * reference_forward:         exact f32 semantics of the PyTorch module.
#   * reference_forward_matched: same math with the kernel's bf16 MXU-operand
#     rounding -> enables a tight (5e-3) logic/layout check.
# ----------------------------------------------------------------------------
def _ref_conv(x, w):
    return lax.conv_general_dilated(
        x, w, window_strides=(1, 1), padding="SAME",
        dimension_numbers=("NCHW", "OIHW", "NCHW"),
        preferred_element_type=jnp.float32,
        precision=lax.Precision.HIGHEST)


def _ref_bn(h, bn):
    g = bn["gamma"][None, :, None, None]
    b = bn["beta"][None, :, None, None]
    m = bn["mean"][None, :, None, None]
    v = bn["var"][None, :, None, None]
    return g * (h - m) / jnp.sqrt(v + _EPS) + b


def _ref_branch(x, bp):
    h = jnp.maximum(x, 0.0)
    h = _ref_bn(_ref_conv(h, bp["w1"]), bp["bn1"])
    h = jnp.maximum(h, 0.0)
    h = _ref_bn(_ref_conv(h, bp["w2"]), bp["bn2"])
    return h


def reference_forward(params, x):
    h1 = _ref_branch(x, params["branch1"])
    h2 = _ref_branch(x, params["branch2"])
    return 0.5 * (h1 + h2) + x


def _ref_branch_matched(x, bp, dt):
    s1, o1 = _fold_bn(bp["bn1"]); s2, o2 = _fold_bn(bp["bn2"])
    bc = lambda v: v[None, :, None, None]
    h = jnp.maximum(x, 0.0).astype(dt)
    h = _ref_conv(h, bp["w1"].astype(dt))                 # bf16 operands, f32 accum
    h = jnp.maximum(h * bc(s1) + bc(o1), 0.0).astype(dt)
    h = _ref_conv(h, bp["w2"].astype(dt))
    return h * bc(s2) + bc(o2)


def reference_forward_matched(params, x, dt=jnp.bfloat16):
    h1 = _ref_branch_matched(x, params["branch1"], dt)
    h2 = _ref_branch_matched(x, params["branch2"], dt)
    return 0.5 * h1 + 0.5 * h2 + x


# ----------------------------------------------------------------------------
if __name__ == "__main__":
    key = jax.random.PRNGKey(0)
    k_x, k_p = jax.random.split(key)

    N, C, H, W = 2, 4, 16, 16                 # equal_io (in_ch == out_ch), stride=1
    x = jax.random.normal(k_x, (N, C, H, W), jnp.float32)
    params = init_shake_block_params(k_p, C, C)

    prepped = prepare_params(params, mxu_dtype=jnp.bfloat16)   # one-time weight prep

    out = jax.block_until_ready(shake_block_forward(prepped, x))

    # Tight logic/layout check: reference with identically-rounded bf16 MXU operands.
    ref_matched = jax.block_until_ready(reference_forward_matched(params, x))
    np.testing.assert_allclose(np.asarray(out), np.asarray(ref_matched),
                               atol=5e-3, rtol=5e-3)

    # Semantic check vs the full-f32 PyTorch-equivalent reference; the slack here is
    # the bf16 MXU-operand quantization budget (outputs are O(1)), not kernel error.
    ref_f32 = jax.block_until_ready(reference_forward(params, x))
    np.testing.assert_allclose(np.asarray(out), np.asarray(ref_f32),
                               atol=0.1, rtol=0.0)

    print("KERNEL_OK")
</pallas_src>

<mosaic_0001>
module attributes {stable_mosaic.version = 11 : i64} {
  func.func @_shake_block_kernel(%arg0: i32, %arg1: memref<1x4x256xf32, #tpu.memory_space<vmem>>, %arg2: memref<9x256xf32, #tpu.memory_space<vmem>>, %arg3: memref<8x36xbf16, #tpu.memory_space<vmem>>, %arg4: memref<8x1xf32, #tpu.memory_space<vmem>>, %arg5: memref<8x1xf32, #tpu.memory_space<vmem>>, %arg6: memref<8x36xbf16, #tpu.memory_space<vmem>>, %arg7: memref<8x1xf32, #tpu.memory_space<vmem>>, %arg8: memref<4x1xf32, #tpu.memory_space<vmem>>, %arg9: memref<1x4x256xf32, #tpu.memory_space<vmem>>, %arg10: memref<36x256xf32, #tpu.memory_space<vmem>>, %arg11: memref<36x256xf32, #tpu.memory_space<vmem>>, %arg12: memref<36x256xf32, #tpu.memory_space<vmem>>) attributes {dimension_semantics = [#tpu.dimension_semantics<parallel>], iteration_bounds = array<i64: 2>, scalar_prefetch = 0 : i64, scratch_operands = 3 : i64, tpu.core_type = #tpu.core_type<tc>, window_params = [{transform_indices = @transform_0, window_bounds = array<i64: 1, 4, 256>}, {pipeline_mode = #tpu.pipeline_mode<synchronous>, transform_indices = @transform_1, window_bounds = array<i64: 9, 256>}, {pipeline_mode = #tpu.pipeline_mode<synchronous>, transform_indices = @transform_2, window_bounds = array<i64: 8, 36>}, {pipeline_mode = #tpu.pipeline_mode<synchronous>, transform_indices = @transform_3, window_bounds = array<i64: 8, 1>}, {pipeline_mode = #tpu.pipeline_mode<synchronous>, transform_indices = @transform_4, window_bounds = array<i64: 8, 1>}, {pipeline_mode = #tpu.pipeline_mode<synchronous>, transform_indices = @transform_5, window_bounds = array<i64: 8, 36>}, {pipeline_mode = #tpu.pipeline_mode<synchronous>, transform_indices = @transform_6, window_bounds = array<i64: 8, 1>}, {pipeline_mode = #tpu.pipeline_mode<synchronous>, transform_indices = @transform_7, window_bounds = array<i64: 4, 1>}, {transform_indices = @transform_8, window_bounds = array<i64: 1, 4, 256>}]} {
    %c0 = arith.constant 0 : index
    %c0_0 = arith.constant 0 : index
    %0 = vector.load %arg3[%c0, %c0_0] : memref<8x36xbf16, #tpu.memory_space<vmem>>, vector<8x36xbf16>
    %c0_1 = arith.constant 0 : index
    %c0_2 = arith.constant 0 : index
    %1 = vector.load %arg6[%c0_1, %c0_2] : memref<8x36xbf16, #tpu.memory_space<vmem>>, vector<8x36xbf16>
    %c0_3 = arith.constant 0 : index
    %c0_4 = arith.constant 0 : index
    %2 = vector.load %arg4[%c0_3, %c0_4] : memref<8x1xf32, #tpu.memory_space<vmem>>, vector<8x1xf32>
    %c0_5 = arith.constant 0 : index
    %c0_6 = arith.constant 0 : index
    %3 = vector.load %arg5[%c0_5, %c0_6] : memref<8x1xf32, #tpu.memory_space<vmem>>, vector<8x1xf32>
    %c0_7 = arith.constant 0 : index
    %c0_8 = arith.constant 0 : index
    %4 = vector.load %arg7[%c0_7, %c0_8] : memref<8x1xf32, #tpu.memory_space<vmem>>, vector<8x1xf32>
    %c0_9 = arith.constant 0 : index
    %c0_10 = arith.constant 0 : index
    %5 = vector.load %arg8[%c0_9, %c0_10] : memref<4x1xf32, #tpu.memory_space<vmem>>, vector<4x1xf32>
    %c0_11 = arith.constant 0 : index
    %c0_12 = arith.constant 0 : index
    %6 = vector.load %arg2[%c0_11, %c0_12] : memref<9x256xf32, #tpu.memory_space<vmem>>, vector<1x256xf32>
    %c1 = arith.constant 1 : index
    %c0_13 = arith.constant 0 : index
    %7 = vector.load %arg2[%c1, %c0_13] : memref<9x256xf32, #tpu.memory_space<vmem>>, vector<1x256xf32>
    %c2 = arith.constant 2 : index
    %c0_14 = arith.constant 0 : index
    %8 = vector.load %arg2[%c2, %c0_14] : memref<9x256xf32, #tpu.memory_space<vmem>>, vector<1x256xf32>
    %c3 = arith.constant 3 : index
    %c0_15 = arith.constant 0 : index
    %9 = vector.load %arg2[%c3, %c0_15] : memref<9x256xf32, #tpu.memory_space<vmem>>, vector<1x256xf32>
    %c5 = arith.constant 5 : index
    %c0_16 = arith.constant 0 : index
    %10 = vector.load %arg2[%c5, %c0_16] : memref<9x256xf32, #tpu.memory_space<vmem>>, vector<1x256xf32>
    %c6 = arith.constant 6 : index
    %c0_17 = arith.constant 0 : index
    %11 = vector.load %arg2[%c6, %c0_17] : memref<9x256xf32, #tpu.memory_space<vmem>>, vector<1x256xf32>
    %c7 = arith.constant 7 : index
    %c0_18 = arith.constant 0 : index
    %12 = vector.load %arg2[%c7, %c0_18] : memref<9x256xf32, #tpu.memory_space<vmem>>, vector<1x256xf32>
    %c8 = arith.constant 8 : index
    %c0_19 = arith.constant 0 : index
    %13 = vector.load %arg2[%c8, %c0_19] : memref<9x256xf32, #tpu.memory_space<vmem>>, vector<1x256xf32>
    %c0_20 = arith.constant 0 : index
    %c0_21 = arith.constant 0 : index
    %c0_22 = arith.constant 0 : index
    %14 = vector.load %arg1[%c0_20, %c0_21, %c0_22] : memref<1x4x256xf32, #tpu.memory_space<vmem>>, vector<1x4x256xf32>
    %15 = vector.shape_cast %14 : vector<1x4x256xf32> to vector<4x256xf32>
    %cst = arith.constant 0.000000e+00 : f32
    %16 = vector.broadcast %cst : f32 to vector<4x256xf32>
    %17 = arith.maximumf %15, %16 : vector<4x256xf32>
    %c17_i32 = arith.constant 17 : i32
    %18 = tpu.dynamic_rotate %17 by %c17_i32 dim 1 : vector<4x256xf32>, i32 -> vector<4x256xf32>
    %19 = vector.broadcast %6 : vector<1x256xf32> to vector<4x256xf32>
    %20 = arith.mulf %18, %19 : vector<4x256xf32>
    %c0_23 = arith.constant 0 : index
    %c0_24 = arith.constant 0 : index
    %21 = vector.load %arg10[%c0_23, %c0_24] : memref<36x256xf32, #tpu.memory_space<vmem>>, vector<4x256xf32>
    tpu.vector_store %arg10[%c0_23, %c0_24], %20 {strides = array<i32>} : memref<36x256xf32, #tpu.memory_space<vmem>>, vector<4x256xf32>,
    %c16_i32 = arith.constant 16 : i32
    %22 = tpu.dynamic_rotate %17 by %c16_i32 dim 1 : vector<4x256xf32>, i32 -> vector<4x256xf32>
    %23 = vector.broadcast %7 : vector<1x256xf32> to vector<4x256xf32>
    %24 = arith.mulf %22, %23 : vector<4x256xf32>
    %c4 = arith.constant 4 : index
    %c0_25 = arith.constant 0 : index
    %25 = vector.load %arg10[%c4, %c0_25] : memref<36x256xf32, #tpu.memory_space<vmem>>, vector<4x256xf32>
    tpu.vector_store %arg10[%c4, %c0_25], %24 {strides = array<i32>} : memref<36x256xf32, #tpu.memory_space<vmem>>, vector<4x256xf32>,
    %c15_i32 = arith.constant 15 : i32
    %26 = tpu.dynamic_rotate %17 by %c15_i32 dim 1 : vector<4x256xf32>, i32 -> vector<4x256xf32>
    %27 = vector.broadcast %8 : vector<1x256xf32> to vector<4x256xf32>
    %28 = arith.mulf %26, %27 : vector<4x256xf32>
    %c8_26 = arith.constant 8 : index
    %c0_27 = arith.constant 0 : index
    %29 = vector.load %arg10[%c8_26, %c0_27] : memref<36x256xf32, #tpu.memory_space<vmem>>, vector<4x256xf32>
    tpu.vector_store %arg10[%c8_26, %c0_27], %28 {strides = array<i32>} : memref<36x256xf32, #tpu.memory_space<vmem>>, vector<4x256xf32>,
    %c1_i32 = arith.constant 1 : i32
    %30 = tpu.dynamic_rotate %17 by %c1_i32 dim 1 : vector<4x256xf32>, i32 -> vector<4x256xf32>
    %31 = vector.broadcast %9 : vector<1x256xf32> to vector<4x256xf32>
    %32 = arith.mulf %30, %31 : vector<4x256xf32>
    %c12 = arith.constant 12 : index
    %c0_28 = arith.constant 0 : index
    %33 = vector.load %arg10[%c12, %c0_28] : memref<36x256xf32, #tpu.memory_space<vmem>>, vector<4x256xf32>
    tpu.vector_store %arg10[%c12, %c0_28], %32 {strides = array<i32>} : memref<36x256xf32, #tpu.memory_space<vmem>>, vector<4x256xf32>,
    %c16 = arith.constant 16 : index
    %c0_29 = arith.constant 0 : index
    %34 = vector.load %arg10[%c16, %c0_29] : memref<36x256xf32, #tpu.memory_space<vmem>>, vector<4x256xf32>
    tpu.vector_store %arg10[%c16, %c0_29], %17 {strides = array<i32>} : memref<36x256xf32, #tpu.memory_space<vmem>>, vector<4x256xf32>,
    %c255_i32 = arith.constant 255 : i32
    %35 = tpu.dynamic_rotate %17 by %c255_i32 dim 1 : vector<4x256xf32>, i32 -> vector<4x256xf32>
    %36 = vector.broadcast %10 : vector<1x256xf32> to vector<4x256xf32>
    %37 = arith.mulf %35, %36 : vector<4x256xf32>
    %c20 = arith.constant 20 : index
    %c0_30 = arith.constant 0 : index
    %38 = vector.load %arg10[%c20, %c0_30] : memref<36x256xf32, #tpu.memory_space<vmem>>, vector<4x256xf32>
    tpu.vector_store %arg10[%c20, %c0_30], %37 {strides = array<i32>} : memref<36x256xf32, #tpu.memory_space<vmem>>, vector<4x256xf32>,
    %c241_i32 = arith.constant 241 : i32
    %39 = tpu.dynamic_rotate %17 by %c241_i32 dim 1 : vector<4x256xf32>, i32 -> vector<4x256xf32>
    %40 = vector.broadcast %11 : vector<1x256xf32> to vector<4x256xf32>
    %41 = arith.mulf %39, %40 : vector<4x256xf32>
    %c24 = arith.constant 24 : index
    %c0_31 = arith.constant 0 : index
    %42 = vector.load %arg10[%c24, %c0_31] : memref<36x256xf32, #tpu.memory_space<vmem>>, vector<4x256xf32>
    tpu.vector_store %arg10[%c24, %c0_31], %41 {strides = array<i32>} : memref<36x256xf32, #tpu.memory_space<vmem>>, vector<4x256xf32>,
    %c240_i32 = arith.constant 240 : i32
    %43 = tpu.dynamic_rotate %17 by %c240_i32 dim 1 : vector<4x256xf32>, i32 -> vector<4x256xf32>
    %44 = vector.broadcast %12 : vector<1x256xf32> to vector<4x256xf32>
    %45 = arith.mulf %43, %44 : vector<4x256xf32>
    %c28 = arith.constant 28 : index
    %c0_32 = arith.constant 0 : index
    %46 = vector.load %arg10[%c28, %c0_32] : memref<36x256xf32, #tpu.memory_space<vmem>>, vector<4x256xf32>
    tpu.vector_store %arg10[%c28, %c0_32], %45 {strides = array<i32>} : memref<36x256xf32, #tpu.memory_space<vmem>>, vector<4x256xf32>,
    %c239_i32 = arith.constant 239 : i32
    %47 = tpu.dynamic_rotate %17 by %c239_i32 dim 1 : vector<4x256xf32>, i32 -> vector<4x256xf32>
    %48 = vector.broadcast %13 : vector<1x256xf32> to vector<4x256xf32>
    %49 = arith.mulf %47, %48 : vector<4x256xf32>
    %c32 = arith.constant 32 : index
    %c0_33 = arith.constant 0 : index
    %50 = vector.load %arg10[%c32, %c0_33] : memref<36x256xf32, #tpu.memory_space<vmem>>, vector<4x256xf32>
    tpu.vector_store %arg10[%c32, %c0_33], %49 {strides = array<i32>} : memref<36x256xf32, #tpu.memory_space<vmem>>, vector<4x256xf32>,
    %c0_34 = arith.constant 0 : index
    %c0_35 = arith.constant 0 : index
    %51 = vector.load %arg10[%c0_34, %c0_35] : memref<36x256xf32, #tpu.memory_space<vmem>>, vector<36x256xf32>
    %52 = arith.truncf %51 : vector<36x256xf32> to vector<36x256xbf16>
    %cst_36 = arith.constant dense<0.000000e+00> : vector<8x256xf32>
    %53 = tpu.matmul %0, %52, %cst_36 {dimension_numbers = #tpu.dot_dimension_numbers<[1], [0], [0], [1], [0, 0, 1, 1], [], []>} : vector<8x36xbf16>, vector<36x256xbf16>, vector<8x256xf32> -> vector<8x256xf32>
    %54 = vector.broadcast %2 : vector<8x1xf32> to vector<8x256xf32>
    %55 = arith.mulf %53, %54 : vector<8x256xf32>
    %56 = vector.broadcast %3 : vector<8x1xf32> to vector<8x256xf32>
    %57 = arith.addf %55, %56 : vector<8x256xf32>
    %cst_37 = arith.constant 0.000000e+00 : f32
    %58 = vector.broadcast %cst_37 : f32 to vector<8x256xf32>
    %59 = arith.maximumf %57, %58 : vector<8x256xf32>
    %60 = vector.extract_strided_slice %59 {offsets = [0, 0], sizes = [4, 256], strides = [1, 1]} : vector<8x256xf32> to vector<4x256xf32>
    %c17_i32_38 = arith.constant 17 : i32
    %61 = tpu.dynamic_rotate %60 by %c17_i32_38 dim 1 : vector<4x256xf32>, i32 -> vector<4x256xf32>
    %62 = vector.broadcast %6 : vector<1x256xf32> to vector<4x256xf32>
    %63 = arith.mulf %61, %62 : vector<4x256xf32>
    %c0_39 = arith.constant 0 : index
    %c0_40 = arith.constant 0 : index
    %64 = vector.load %arg11[%c0_39, %c0_40] : memref<36x256xf32, #tpu.memory_space<vmem>>, vector<4x256xf32>
    tpu.vector_store %arg11[%c0_39, %c0_40], %63 {strides = array<i32>} : memref<36x256xf32, #tpu.memory_space<vmem>>, vector<4x256xf32>,
    %c16_i32_41 = arith.constant 16 : i32
    %65 = tpu.dynamic_rotate %60 by %c16_i32_41 dim 1 : vector<4x256xf32>, i32 -> vector<4x256xf32>
    %66 = vector.broadcast %7 : vector<1x256xf32> to vector<4x256xf32>
    %67 = arith.mulf %65, %66 : vector<4x256xf32>
    %c4_42 = arith.constant 4 : index
    %c0_43 = arith.constant 0 : index
    %68 = vector.load %arg11[%c4_42, %c0_43] : memref<36x256xf32, #tpu.memory_space<vmem>>, vector<4x256xf32>
    tpu.vector_store %arg11[%c4_42, %c0_43], %67 {strides = array<i32>} : memref<36x256xf32, #tpu.memory_space<vmem>>, vector<4x256xf32>,
    %c15_i32_44 = arith.constant 15 : i32
    %69 = tpu.dynamic_rotate %60 by %c15_i32_44 dim 1 : vector<4x256xf32>, i32 -> vector<4x256xf32>
    %70 = vector.broadcast %8 : vector<1x256xf32> to vector<4x256xf32>
    %71 = arith.mulf %69, %70 : vector<4x256xf32>
    %c8_45 = arith.constant 8 : index
    %c0_46 = arith.constant 0 : index
    %72 = vector.load %arg11[%c8_45, %c0_46] : memref<36x256xf32, #tpu.memory_space<vmem>>, vector<4x256xf32>
    tpu.vector_store %arg11[%c8_45, %c0_46], %71 {strides = array<i32>} : memref<36x256xf32, #tpu.memory_space<vmem>>, vector<4x256xf32>,
    %c1_i32_47 = arith.constant 1 : i32
    %73 = tpu.dynamic_rotate %60 by %c1_i32_47 dim 1 : vector<4x256xf32>, i32 -> vector<4x256xf32>
    %74 = vector.broadcast %9 : vector<1x256xf32> to vector<4x256xf32>
    %75 = arith.mulf %73, %74 : vector<4x256xf32>
    %c12_48 = arith.constant 12 : index
    %c0_49 = arith.constant 0 : index
    %76 = vector.load %arg11[%c12_48, %c0_49] : memref<36x256xf32, #tpu.memory_space<vmem>>, vector<4x256xf32>
    tpu.vector_store %arg11[%c12_48, %c0_49], %75 {strides = array<i32>} : memref<36x256xf32, #tpu.memory_space<vmem>>, vector<4x256xf32>,
    %c16_50 = arith.constant 16 : index
    %c0_51 = arith.constant 0 : index
    %77 = vector.load %arg11[%c16_50, %c0_51] : memref<36x256xf32, #tpu.memory_space<vmem>>, vector<4x256xf32>
    tpu.vector_store %arg11[%c16_50, %c0_51], %60 {strides = array<i32>} : memref<36x256xf32, #tpu.memory_space<vmem>>, vector<4x256xf32>,
    %c255_i32_52 = arith.constant 255 : i32
    %78 = tpu.dynamic_rotate %60 by %c255_i32_52 dim 1 : vector<4x256xf32>, i32 -> vector<4x256xf32>
    %79 = vector.broadcast %10 : vector<1x256xf32> to vector<4x256xf32>
    %80 = arith.mulf %78, %79 : vector<4x256xf32>
    %c20_53 = arith.constant 20 : index
    %c0_54 = arith.constant 0 : index
    %81 = vector.load %arg11[%c20_53, %c0_54] : memref<36x256xf32, #tpu.memory_space<vmem>>, vector<4x256xf32>
    tpu.vector_store %arg11[%c20_53, %c0_54], %80 {strides = array<i32>} : memref<36x256xf32, #tpu.memory_space<vmem>>, vector<4x256xf32>,
    %c241_i32_55 = arith.constant 241 : i32
    %82 = tpu.dynamic_rotate %60 by %c241_i32_55 dim 1 : vector<4x256xf32>, i32 -> vector<4x256xf32>
    %83 = vector.broadcast %11 : vector<1x256xf32> to vector<4x256xf32>
    %84 = arith.mulf %82, %83 : vector<4x256xf32>
    %c24_56 = arith.constant 24 : index
    %c0_57 = arith.constant 0 : index
    %85 = vector.load %arg11[%c24_56, %c0_57] : memref<36x256xf32, #tpu.memory_space<vmem>>, vector<4x256xf32>
    tpu.vector_store %arg11[%c24_56, %c0_57], %84 {strides = array<i32>} : memref<36x256xf32, #tpu.memory_space<vmem>>, vector<4x256xf32>,
    %c240_i32_58 = arith.constant 240 : i32
    %86 = tpu.dynamic_rotate %60 by %c240_i32_58 dim 1 : vector<4x256xf32>, i32 -> vector<4x256xf32>
    %87 = vector.broadcast %12 : vector<1x256xf32> to vector<4x256xf32>
    %88 = arith.mulf %86, %87 : vector<4x256xf32>
    %c28_59 = arith.constant 28 : index
    %c0_60 = arith.constant 0 : index
    %89 = vector.load %arg11[%c28_59, %c0_60] : memref<36x256xf32, #tpu.memory_space<vmem>>, vector<4x256xf32>
    tpu.vector_store %arg11[%c28_59, %c0_60], %88 {strides = array<i32>} : memref<36x256xf32, #tpu.memory_space<vmem>>, vector<4x256xf32>,
    %c239_i32_61 = arith.constant 239 : i32
    %90 = tpu.dynamic_rotate %60 by %c239_i32_61 dim 1 : vector<4x256xf32>, i32 -> vector<4x256xf32>
    %91 = vector.broadcast %13 : vector<1x256xf32> to vector<4x256xf32>
    %92 = arith.mulf %90, %91 : vector<4x256xf32>
    %c32_62 = arith.constant 32 : index
    %c0_63 = arith.constant 0 : index
    %93 = vector.load %arg11[%c32_62, %c0_63] : memref<36x256xf32, #tpu.memory_space<vmem>>, vector<4x256xf32>
    tpu.vector_store %arg11[%c32_62, %c0_63], %92 {strides = array<i32>} : memref<36x256xf32, #tpu.memory_space<vmem>>, vector<4x256xf32>,
    %94 = vector.extract_strided_slice %59 {offsets = [4, 0], sizes = [4, 256], strides = [1, 1]} : vector<8x256xf32> to vector<4x256xf32>
    %c17_i32_64 = arith.constant 17 : i32
    %95 = tpu.dynamic_rotate %94 by %c17_i32_64 dim 1 : vector<4x256xf32>, i32 -> vector<4x256xf32>
    %96 = vector.broadcast %6 : vector<1x256xf32> to vector<4x256xf32>
    %97 = arith.mulf %95, %96 : vector<4x256xf32>
    %c0_65 = arith.constant 0 : index
    %c0_66 = arith.constant 0 : index
    %98 = vector.load %arg12[%c0_65, %c0_66] : memref<36x256xf32, #tpu.memory_space<vmem>>, vector<4x256xf32>
    tpu.vector_store %arg12[%c0_65, %c0_66], %97 {strides = array<i32>} : memref<36x256xf32, #tpu.memory_space<vmem>>, vector<4x256xf32>,
    %c16_i32_67 = arith.constant 16 : i32
    %99 = tpu.dynamic_rotate %94 by %c16_i32_67 dim 1 : vector<4x256xf32>, i32 -> vector<4x256xf32>
    %100 = vector.broadcast %7 : vector<1x256xf32> to vector<4x256xf32>
    %101 = arith.mulf %99, %100 : vector<4x256xf32>
    %c4_68 = arith.constant 4 : index
    %c0_69 = arith.constant 0 : index
    %102 = vector.load %arg12[%c4_68, %c0_69] : memref<36x256xf32, #tpu.memory_space<vmem>>, vector<4x256xf32>
    tpu.vector_store %arg12[%c4_68, %c0_69], %101 {strides = array<i32>} : memref<36x256xf32, #tpu.memory_space<vmem>>, vector<4x256xf32>,
    %c15_i32_70 = arith.constant 15 : i32
    %103 = tpu.dynamic_rotate %94 by %c15_i32_70 dim 1 : vector<4x256xf32>, i32 -> vector<4x256xf32>
    %104 = vector.broadcast %8 : vector<1x256xf32> to vector<4x256xf32>
    %105 = arith.mulf %103, %104 : vector<4x256xf32>
    %c8_71 = arith.constant 8 : index
    %c0_72 = arith.constant 0 : index
    %106 = vector.load %arg12[%c8_71, %c0_72] : memref<36x256xf32, #tpu.memory_space<vmem>>, vector<4x256xf32>
    tpu.vector_store %arg12[%c8_71, %c0_72], %105 {strides = array<i32>} : memref<36x256xf32, #tpu.memory_space<vmem>>, vector<4x256xf32>,
    %c1_i32_73 = arith.constant 1 : i32
    %107 = tpu.dynamic_rotate %94 by %c1_i32_73 dim 1 : vector<4x256xf32>, i32 -> vector<4x256xf32>
    %108 = vector.broadcast %9 : vector<1x256xf32> to vector<4x256xf32>
    %109 = arith.mulf %107, %108 : vector<4x256xf32>
    %c12_74 = arith.constant 12 : index
    %c0_75 = arith.constant 0 : index
    %110 = vector.load %arg12[%c12_74, %c0_75] : memref<36x256xf32, #tpu.memory_space<vmem>>, vector<4x256xf32>
    tpu.vector_store %arg12[%c12_74, %c0_75], %109 {strides = array<i32>} : memref<36x256xf32, #tpu.memory_space<vmem>>, vector<4x256xf32>,
    %c16_76 = arith.constant 16 : index
    %c0_77 = arith.constant 0 : index
    %111 = vector.load %arg12[%c16_76, %c0_77] : memref<36x256xf32, #tpu.memory_space<vmem>>, vector<4x256xf32>
    tpu.vector_store %arg12[%c16_76, %c0_77], %94 {strides = array<i32>} : memref<36x256xf32, #tpu.memory_space<vmem>>, vector<4x256xf32>,
    %c255_i32_78 = arith.constant 255 : i32
    %112 = tpu.dynamic_rotate %94 by %c255_i32_78 dim 1 : vector<4x256xf32>, i32 -> vector<4x256xf32>
    %113 = vector.broadcast %10 : vector<1x256xf32> to vector<4x256xf32>
    %114 = arith.mulf %112, %113 : vector<4x256xf32>
    %c20_79 = arith.constant 20 : index
    %c0_80 = arith.constant 0 : index
    %115 = vector.load %arg12[%c20_79, %c0_80] : memref<36x256xf32, #tpu.memory_space<vmem>>, vector<4x256xf32>
    tpu.vector_store %arg12[%c20_79, %c0_80], %114 {strides = array<i32>} : memref<36x256xf32, #tpu.memory_space<vmem>>, vector<4x256xf32>,
    %c241_i32_81 = arith.constant 241 : i32
    %116 = tpu.dynamic_rotate %94 by %c241_i32_81 dim 1 : vector<4x256xf32>, i32 -> vector<4x256xf32>
    %117 = vector.broadcast %11 : vector<1x256xf32> to vector<4x256xf32>
    %118 = arith.mulf %116, %117 : vector<4x256xf32>
    %c24_82 = arith.constant 24 : index
    %c0_83 = arith.constant 0 : index
    %119 = vector.load %arg12[%c24_82, %c0_83] : memref<36x256xf32, #tpu.memory_space<vmem>>, vector<4x256xf32>
    tpu.vector_store %arg12[%c24_82, %c0_83], %118 {strides = array<i32>} : memref<36x256xf32, #tpu.memory_space<vmem>>, vector<4x256xf32>,
    %c240_i32_84 = arith.constant 240 : i32
    %120 = tpu.dynamic_rotate %94 by %c240_i32_84 dim 1 : vector<4x256xf32>, i32 -> vector<4x256xf32>
    %121 = vector.broadcast %12 : vector<1x256xf32> to vector<4x256xf32>
    %122 = arith.mulf %120, %121 : vector<4x256xf32>
    %c28_85 = arith.constant 28 : index
    %c0_86 = arith.constant 0 : index
    %123 = vector.load %arg12[%c28_85, %c0_86] : memref<36x256xf32, #tpu.memory_space<vmem>>, vector<4x256xf32>
    tpu.vector_store %arg12[%c28_85, %c0_86], %122 {strides = array<i32>} : memref<36x256xf32, #tpu.memory_space<vmem>>, vector<4x256xf32>,
    %c239_i32_87 = arith.constant 239 : i32
    %124 = tpu.dynamic_rotate %94 by %c239_i32_87 dim 1 : vector<4x256xf32>, i32 -> vector<4x256xf32>
    %125 = vector.broadcast %13 : vector<1x256xf32> to vector<4x256xf32>
    %126 = arith.mulf %124, %125 : vector<4x256xf32>
    %c32_88 = arith.constant 32 : index
    %c0_89 = arith.constant 0 : index
    %127 = vector.load %arg12[%c32_88, %c0_89] : memref<36x256xf32, #tpu.memory_space<vmem>>, vector<4x256xf32>
    tpu.vector_store %arg12[%c32_88, %c0_89], %126 {strides = array<i32>} : memref<36x256xf32, #tpu.memory_space<vmem>>, vector<4x256xf32>,
    %128 = vector.extract_strided_slice %1 {offsets = [0, 0], sizes = [4, 36], strides = [1, 1]} : vector<8x36xbf16> to vector<4x36xbf16>
    %c0_90 = arith.constant 0 : index
    %c0_91 = arith.constant 0 : index
    %129 = vector.load %arg11[%c0_90, %c0_91] : memref<36x256xf32, #tpu.memory_space<vmem>>, vector<36x256xf32>
    %130 = arith.truncf %129 : vector<36x256xf32> to vector<36x256xbf16>
    %cst_92 = arith.constant dense<0.000000e+00> : vector<4x256xf32>
    %131 = tpu.matmul %128, %130, %cst_92 {dimension_numbers = #tpu.dot_dimension_numbers<[1], [0], [0], [1], [0, 0, 1, 1], [], []>} : vector<4x36xbf16>, vector<36x256xbf16>, vector<4x256xf32> -> vector<4x256xf32>
    %132 = vector.extract_strided_slice %1 {offsets = [4, 0], sizes = [4, 36], strides = [1, 1]} : vector<8x36xbf16> to vector<4x36xbf16>
    %c0_93 = arith.constant 0 : index
    %c0_94 = arith.constant 0 : index
    %133 = vector.load %arg12[%c0_93, %c0_94] : memref<36x256xf32, #tpu.memory_space<vmem>>, vector<36x256xf32>
    %134 = arith.truncf %133 : vector<36x256xf32> to vector<36x256xbf16>
    %cst_95 = arith.constant dense<0.000000e+00> : vector<4x256xf32>
    %135 = tpu.matmul %132, %134, %cst_95 {dimension_numbers = #tpu.dot_dimension_numbers<[1], [0], [0], [1], [0, 0, 1, 1], [], []>} : vector<4x36xbf16>, vector<36x256xbf16>, vector<4x256xf32> -> vector<4x256xf32>
    %136 = vector.extract_strided_slice %4 {offsets = [0, 0], sizes = [4, 1], strides = [1, 1]} : vector<8x1xf32> to vector<4x1xf32>
    %137 = vector.broadcast %136 : vector<4x1xf32> to vector<4x256xf32>
    %138 = arith.mulf %131, %137 : vector<4x256xf32>
    %139 = vector.extract_strided_slice %4 {offsets = [4, 0], sizes = [4, 1], strides = [1, 1]} : vector<8x1xf32> to vector<4x1xf32>
    %140 = vector.broadcast %139 : vector<4x1xf32> to vector<4x256xf32>
    %141 = arith.mulf %135, %140 : vector<4x256xf32>
    %142 = arith.addf %138, %141 : vector<4x256xf32>
    %143 = vector.broadcast %5 : vector<4x1xf32> to vector<4x256xf32>
    %144 = arith.addf %142, %143 : vector<4x256xf32>
    %145 = arith.addf %144, %15 : vector<4x256xf32>
    %c0_96 = arith.constant 0 : index
    %c0_97 = arith.constant 0 : index
    %c0_98 = arith.constant 0 : index
    %146 = vector.load %arg9[%c0_96, %c0_97, %c0_98] : memref<1x4x256xf32, #tpu.memory_space<vmem>>, vector<1x4x256xf32>
    %147 = vector.shape_cast %146 : vector<1x4x256xf32> to vector<4x256xf32>
    %148 = vector.shape_cast %145 : vector<4x256xf32> to vector<1x4x256xf32>
    tpu.vector_store %arg9[%c0_96, %c0_97, %c0_98], %148 {strides = array<i32>} : memref<1x4x256xf32, #tpu.memory_space<vmem>>, vector<1x4x256xf32>,
    return
  }
  func.func @transform_0(%arg0: i32) -> (i32, i32, i32) {
    %c0_i32 = arith.constant 0 : i32
    %c0_i32_0 = arith.constant 0 : i32
    %c0_i32_1 = arith.constant 0 : i32
    return %arg0, %c0_i32, %c0_i32_0 : i32, i32, i32
  }
  func.func @transform_1(%arg0: i32) -> (i32, i32) {
    %c0_i32 = arith.constant 0 : i32
    %c0_i32_0 = arith.constant 0 : i32
    %c0_i32_1 = arith.constant 0 : i32
    return %c0_i32, %c0_i32_0 : i32, i32
  }
  func.func @transform_2(%arg0: i32) -> (i32, i32) {
    %c0_i32 = arith.constant 0 : i32
    %c0_i32_0 = arith.constant 0 : i32
    %c0_i32_1 = arith.constant 0 : i32
    return %c0_i32, %c0_i32_0 : i32, i32
  }
  func.func @transform_3(%arg0: i32) -> (i32, i32) {
    %c0_i32 = arith.constant 0 : i32
    %c0_i32_0 = arith.constant 0 : i32
    %c0_i32_1 = arith.constant 0 : i32
    return %c0_i32, %c0_i32_0 : i32, i32
  }
  func.func @transform_4(%arg0: i32) -> (i32, i32) {
    %c0_i32 = arith.constant 0 : i32
    %c0_i32_0 = arith.constant 0 : i32
    %c0_i32_1 = arith.constant 0 : i32
    return %c0_i32, %c0_i32_0 : i32, i32
  }
  func.func @transform_5(%arg0: i32) -> (i32, i32) {
    %c0_i32 = arith.constant 0 : i32
    %c0_i32_0 = arith.constant 0 : i32
    %c0_i32_1 = arith.constant 0 : i32
    return %c0_i32, %c0_i32_0 : i32, i32
  }
  func.func @transform_6(%arg0: i32) -> (i32, i32) {
    %c0_i32 = arith.constant 0 : i32
    %c0_i32_0 = arith.constant 0 : i32
    %c0_i32_1 = arith.constant 0 : i32
    return %c0_i32, %c0_i32_0 : i32, i32
  }
  func.func @transform_7(%arg0: i32) -> (i32, i32) {
    %c0_i32 = arith.constant 0 : i32
    %c0_i32_0 = arith.constant 0 : i32
    %c0_i32_1 = arith.constant 0 : i32
    return %c0_i32, %c0_i32_0 : i32, i32
  }
  func.func @transform_8(%arg0: i32) -> (i32, i32, i32) {
    %c0_i32 = arith.constant 0 : i32
    %c0_i32_0 = arith.constant 0 : i32
    %c0_i32_1 = arith.constant 0 : i32
    return %arg0, %c0_i32, %c0_i32_0 : i32, i32, i32
  }
}

</mosaic_0001>

<bundles_post_ra>
// kernel: shake_block_forward.1
= control target key start
LH: loop header
LB: loop body
LE: loop exit
PB: predicated region body
PF: predicated region fallthrough
CT: control target
= control target key end

     0   :  { %s1170_s27 = smov 0   ;;  %s1515_s0 = inlined_call_operand.vmem [shape: f32[2,4,256], index: 0, kind: input, shape index: {}]   ;;  %s1516_s1 = inlined_call_operand.vmem [shape: f32[9,256], index: 1, kind: input, shape index: {}]   ;;  %s1517_s2 = inlined_call_operand.vmem [shape: bf16[8,36], index: 2, kind: input, shape index: {}]   ;;  %s1518_s3 = inlined_call_operand.vmem [shape: f32[8,1], index: 3, kind: input, shape index: {}]   ;;  %s1519_s4 = inlined_call_operand.vmem [shape: f32[8,1], index: 4, kind: input, shape index: {}]   ;;  %s1520_s5 = inlined_call_operand.vmem [shape: bf16[8,36], index: 5, kind: input, shape index: {}]   ;;  %s1521_s6 = inlined_call_operand.vmem [shape: f32[8,1], index: 6, kind: input, shape index: {}]   ;;  %s1522_s7 = inlined_call_operand.vmem [shape: f32[4,1], index: 7, kind: input, shape index: {}]   ;;  %s1523_s8 = inlined_call_operand.vmem [shape: f32[2,4,256], index: 8, kind: output, shape index: {}]  }
   0x1 LB: > { %s1060_s28 = sadd.s32 4294967295, %s1114_s27   ;;  %p1064_p0 = scmp.ge.s32.totalorder %s1114_s27, 1  ;;  %s1114_s27 = sphi %s1170_s27, %s18_s27  }
   0x2   : > { %p262_p1 = scmp.lt.s32.totalorder %s1114_s27, 3 }
   0x4   : > { %p263_p2 = pnand %p1064_p0, %p262_p1 }
   0x5   : > { %p296_p3 = scmp.lt.s32.totalorder (!%p263_p2), %s1060_s28, 1  ;;  %s1116_s11 = smov (!%p263_p2), 1   ;;  %v1124_v3 = vmov (!%p263_p2), 0   ;;  %v309_v4 = vld [vmem:[%s1518_s3] sm:$0xff] (!%p263_p2)  ;;  %v337_v6 = vlaneseq (!%p263_p2)  ;;  %vm557_vm8 = vcmask (!%p263_p2), 1041408   ;;  %vm553_vm9 = vcmask (!%p263_p2), 293888  }
   0x6   : > { %266 = sbr.rel (%p263_p2) target bundleno = 814 (0x32e), region = 52  ;;  %s1117_s12 = smov (!%p263_p2), 16   ;;  %596 = vmatprep.mubr.bf16.mxu0 (!%p263_p2), %v1124_v3  ;;  %1104 = vset.pattern.permute.xlu0 (!%p263_p2), %v1124_v3  ;;  %v310_v5 = vld [vmem:[%s1519_s4] sm:$0xff] (!%p263_p2) }
   0x7   : > { %s1118_s13 = smov (!%p263_p2), 17   ;;  %s1119_s14 = smov (!%p263_p2), 15   ;;  %1105 = vset.pattern.permute.xlu1 (!%p263_p2), %v1124_v3  ;;  %896 = vmatprep.mubr.bf16.mxu1 (!%p263_p2), %v1124_v3  ;;  %v344_v7 = vshrl.u32 (!%p263_p2), %v337_v6, 7  ;;  %v1215_v8 = vand.u32 (!%p263_p2), 127, %v337_v6 }
   0x8   : > { %s1120_s15 = smov (!%p263_p2), 127   ;;  %s1121_s16 = smov (!%p263_p2), 112   ;;  %v1071_v11 = vld [vmem:[%s1516_s1 + $0x3] ss:$8 sm:$0x3] (!%p263_p2) }
   0x9   : > { %s1122_s17 = smov (!%p263_p2), 113   ;;  %s1123_s18 = smov (!%p263_p2), 111   ;;  %v1217_v9 = vsub.s32 (!%p263_p2), 0, %v344_v7  ;;  %v1219_v10 = vsub.s32 (!%p263_p2), 1, %v344_v7  ;;  %vm411_vm0 = vcmp.lt.s32.totalorder (!%p263_p2), %v1215_v8, 1  ;;  %vm339_vm1 = vcmp.lt.s32.totalorder (!%p263_p2), %v1215_v8, 17 }
   0xa   : > { %v313_v16 = vld [vmem:[%s1516_s1] ss:$8 sm:$0x3] (!%p263_p2)  ;;  %v1069_v17 = vld [vmem:[%s1516_s1 + $0x1] ss:$8 sm:$0x3] (!%p263_p2) }
   0xb   : > { %v1226_v14 = vrot.slane (!%p263_p2), %v1071_v11, %v1217_v9  ;;  %v1229_v15 = vrot.slane (!%p263_p2), %v1071_v11, %v1219_v10  ;;  %vm361_vm2 = vcmp.lt.s32.totalorder (!%p263_p2), %v1215_v8, 16  ;;  %v1244_v22 = vrot.slane (!%p263_p2), %v313_v16, %v1217_v9  ;;  %v1070_v24 = vld [vmem:[%s1516_s1 + $0x2] ss:$8 sm:$0x3] (!%p263_p2) }
   0xc   : > { %v1247_v23 = vrot.slane (!%p263_p2), %v313_v16, %v1219_v10  ;;  %v1255_v27 = vrot.slane (!%p263_p2), %v1069_v17, %v1217_v9  ;;  %v1258_v28 = vrot.slane (!%p263_p2), %v1069_v17, %v1219_v10  ;;  %vm389_vm3 = vcmp.lt.s32.totalorder (!%p263_p2), %v1215_v8, 15  ;;  %v1072_v43 = vld [vmem:[%s1516_s1 + $0x5] ss:$8 sm:$0x3] (!%p263_p2) }
   0xd   : > { %s1525_s28 = smov (!%p296_p3, %s1060_s28), 1  ;;  %v1262_v33 = vrot.slane %v1070_v24, %v1217_v9  ;;  %v1265_v34 = vrot.slane %v1070_v24, %v1219_v10  ;;  %vm441_vm4 = vcmp.lt.s32.totalorder %v1215_v8, 127  ;;  %v1290_v52 = vrot.slane %v1072_v43, %v1217_v9  ;;  %v1074_v54 = vld [vmem:[%s1516_s1 + $0x7] ss:$8 sm:$0x3] }
   0xe   : > { %s1085_s29 = sshll.u32 %s1525_s28, 3  ;;  %v1293_v53 = vrot.slane %v1072_v43, %v1219_v10  ;;  %vm491_vm5 = vcmp.lt.s32.totalorder %v1215_v8, 112  ;;  %v1306_v61 = vrot.slane %v1074_v54, %v1217_v9  ;;  %v1309_v62 = vrot.slane %v1074_v54, %v1219_v10  ;;  %v1073_v63 = vld [vmem:[%s1516_s1 + $0x6] ss:$8 sm:$0x3] }
   0xf   : > { %s300_s10 = scalar_lea.vmem %s1515_s0, %s1085_s29  ;;  %vm469_vm6 = vcmp.lt.s32.totalorder %v1215_v8, 113  ;;  %v1325_v16 = vrot.slane %v1073_v63, %v1219_v10  ;;  %vm519_vm7 = vcmp.lt.s32.totalorder %v1215_v8, 111  ;;  %s305_s19 = scalar_lea.vmem %s1523_s8, %s1085_s29 }
  0x10   : > { %v1186_v0 = vld [vmem:[%s300_s10] sm:$0xff] }
  0x11   : > { %v329_v1 = vmax.f32 %v1186_v0, 0.0 }
  0x13   : > { %407 = vrot.lane.b32.xlu1 %v329_v1, %s1116_s11  ;;  %435 = vst [vmem:[#allocation2 + $0x20] sm:$0xf] %v329_v1  ;;  %357 = vrot.lane.b32.xlu0 %v329_v1, %s1117_s12  ;;  %v331_v2 = vcombine.high %v329_v1, %v329_v1 }
  0x15   : > { %436 = vst [vmem:[#allocation2 + $0x28] sm:$0xf] %v331_v2 }
  0x17   : > { %333 = vrot.lane.b32.xlu0 %v329_v1, %s1118_s13  ;;  %409 = vrot.lane.b32.xlu1 %v331_v2, %s1116_s11 }
  0x1b   : > { %335 = vrot.lane.b32.xlu1 %v331_v2, %s1118_s13  ;;  %359 = vrot.lane.b32.xlu0 %v331_v2, %s1117_s12 }
  0x1f   : > { %387 = vrot.lane.b32.xlu1 %v331_v2, %s1119_s14  ;;  %385 = vrot.lane.b32.xlu0 %v329_v1, %s1119_s14 }
  0x23   : > { %439 = vrot.lane.b32.xlu1 %v331_v2, %s1120_s15  ;;  %437 = vrot.lane.b32.xlu0 %v329_v1, %s1120_s15 }
  0x27   : > { %489 = vrot.lane.b32.xlu1 %v331_v2, %s1121_s16  ;;  %487 = vrot.lane.b32.xlu0 %v329_v1, %s1121_s16 }
  0x2b   : > { %467 = vrot.lane.b32.xlu1 %v331_v2, %s1122_s17  ;;  %465 = vrot.lane.b32.xlu0 %v329_v1, %s1122_s17 }
  0x2f   : > { %517 = vrot.lane.b32.xlu1 %v331_v2, %s1123_s18  ;;  %515 = vrot.lane.b32.xlu0 %v329_v1, %s1123_s18 }
  0x33   : > { %607 = vperm.xlu0 %1104, %v309_v4   ;;  %614 = vperm.xlu1 %1105, %v310_v5  }
  0x85   : > { %v408_v12 = vpop.permute.xlu1 %407  ;;  %v358_v13 = vpop.permute.xlu0 %357 }
  0x89   : > { %v334_v18 = vpop.permute.xlu0 %333  ;;  %v410_v19 = vpop.permute.xlu1 %409 }
  0x8a   : > { %v412_v20 = vsel %vm411_vm0, %v408_v12, %v410_v19  ;;  %v413_v21 = vsel %vm411_vm0, %v410_v19, %v408_v12 }
  0x8b   : > { %v425_v25 = vmul.f32 %v1226_v14, %v413_v21  ;;  %v426_v26 = vmul.f32 %v1229_v15, %v412_v20 }
  0x8d   : > { %v429_v29 = vrot.slane %v425_v25, 4  ;;  %v430_v30 = vrot.slane %v426_v26, 4  ;;  %v336_v31 = vpop.permute.xlu1 %335  ;;  %v360_v32 = vpop.permute.xlu0 %359 }
  0x8e   : > { %v340_v35 = vsel %vm339_vm1, %v334_v18, %v336_v31  ;;  %v341_v36 = vsel %vm339_vm1, %v336_v31, %v334_v18  ;;  %v362_v37 = vsel %vm361_vm2, %v358_v13, %v360_v32  ;;  %v363_v38 = vsel %vm361_vm2, %v360_v32, %v358_v13  ;;  %v1075_v18 = vld [vmem:[%s1516_s1 + $0x10] ss:$8 sm:$0x3] }
  0x8f   : > { %433 = vst [vmem:[#allocation2 + $0x10] sm:$0xf0] %v429_v29  ;;  %434 = vst [vmem:[#allocation2 + $0x18] sm:$0xf0] %v430_v30  ;;  %v353_v39 = vmul.f32 %v1244_v22, %v341_v36  ;;  %v354_v40 = vmul.f32 %v1247_v23, %v340_v35  ;;  %v375_v41 = vmul.f32 %v1255_v27, %v363_v38 }
  0x90   : > { %v376_v42 = vmul.f32 %v1258_v28, %v362_v37  ;;  %v1322_v13 = vrot.slane %v1073_v63, %v1217_v9  ;;  %v1338_v38 = vrot.slane %v1075_v18, %v1217_v9 }
  0x91   : > { %355 = vst [vmem:[#allocation2] sm:$0xf] %v353_v39  ;;  %356 = vst [vmem:[#allocation2 + $0x8] sm:$0xf] %v354_v40  ;;  %v379_v44 = vrot.slane %v375_v41, 4  ;;  %v388_v46 = vpop.permute.xlu1 %387  ;;  %v386_v47 = vpop.permute.xlu0 %385  ;;  %v1341_v39 = vrot.slane %v1075_v18, %v1219_v10  ;;  %v311_v18 = vld [vmem:[%s1521_s6] sm:$0xff] }
  0x92   : > { %v380_v45 = vrot.slane %v376_v42, 4  ;;  %v390_v48 = vsel %vm389_vm3, %v386_v47, %v388_v46  ;;  %v391_v49 = vsel %vm389_vm3, %v388_v46, %v386_v47 }
  0x93   : > { %383 = vst [vmem:[#allocation2] sm:$0xf0] %v379_v44  ;;  %v403_v50 = vmul.f32 %v1262_v33, %v391_v49  ;;  %v404_v51 = vmul.f32 %v1265_v34, %v390_v48 }
  0x94   : > { %384 = vst [vmem:[#allocation2 + $0x8] sm:$0xf0] %v380_v45 }
  0x95   : > { %405 = vst [vmem:[#allocation2 + $0x10] sm:$0xf] %v403_v50  ;;  %406 = vst [vmem:[#allocation2 + $0x18] sm:$0xf] %v404_v51  ;;  %v440_v55 = vpop.permute.xlu1 %439  ;;  %v438_v56 = vpop.permute.xlu0 %437 }
  0x96   : > { %v442_v57 = vsel %vm441_vm4, %v438_v56, %v440_v55  ;;  %v443_v58 = vsel %vm441_vm4, %v440_v55, %v438_v56 }
  0x97   : > { %v455_v59 = vmul.f32 %v1290_v52, %v442_v57  ;;  %v456_v60 = vmul.f32 %v1293_v53, %v443_v58  ;;  %v307_v57 = vld [vmem:[%s1517_s2] sm:$0xf] }
  0x99   : > { %v459_v1 = vrot.slane %v455_v59, 4  ;;  %v460_v2 = vrot.slane %v456_v60, 4  ;;  %v490_v4 = vpop.permute.xlu1 %489  ;;  %v488_v5 = vpop.permute.xlu0 %487 }
  0x9a   : > { %v492_v6 = vsel %vm491_vm5, %v488_v5, %v490_v4  ;;  %v493_v7 = vsel %vm491_vm5, %v490_v4, %v488_v5  ;;  %v537_v20 = vld [vmem:[#allocation2] sm:$0xff] }
  0x9b   : > { %463 = vst [vmem:[#allocation2 + $0x20] sm:$0xf0] %v459_v1  ;;  %464 = vst [vmem:[#allocation2 + $0x28] sm:$0xf0] %v460_v2  ;;  %v505_v11 = vmul.f32 %v1306_v61, %v492_v6  ;;  %v506_v12 = vmul.f32 %v1309_v62, %v493_v7  ;;  %v538_v17 = vld [vmem:[#allocation2 + $0x8] sm:$0xff] }
  0x9c   : > { %v540_v19 = vld [vmem:[#allocation2 + $0x18] sm:$0xff]  ;;  %v539_v21 = vld [vmem:[#allocation2 + $0x10] sm:$0xff] }
  0x9d   : > { %v509_v24 = vrot.slane %v505_v11, 4  ;;  %v510_v25 = vrot.slane %v506_v12, 4  ;;  %v468_v26 = vpop.permute.xlu1 %467  ;;  %v466_v29 = vpop.permute.xlu0 %465  ;;  %v548_v30 = vpack.c.bf16 %v540_v19, %v538_v17  ;;  %v547_v31 = vpack.c.bf16 %v539_v21, %v537_v20  ;;  %v312_v19 = vld [vmem:[%s1522_s7] sm:$0xf] }
  0x9e   : > { %v470_v32 = vsel %vm469_vm6, %v466_v29, %v468_v26  ;;  %v471_v35 = vsel %vm469_vm6, %v468_v26, %v466_v29 }
  0x9f   : > { %513 = vst [vmem:[#allocation2 + $0x30] sm:$0xf0] %v509_v24  ;;  %514 = vst [vmem:[#allocation2 + $0x38] sm:$0xf0] %v510_v25  ;;  %v483_v36 = vmul.f32 %v1322_v13, %v470_v32  ;;  %v484_v37 = vmul.f32 %v1325_v16, %v471_v35  ;;  %564 = vmatprep.subr.bf16.mxu0 %v548_v30 }
  0xa0   : > { %565 = vmatpush1.bf16.msra.mxu0 %v547_v31 }
  0xa1   : > { %485 = vst [vmem:[#allocation2 + $0x30] sm:$0xf] %v483_v36  ;;  %486 = vst [vmem:[#allocation2 + $0x38] sm:$0xf] %v484_v37  ;;  %v518_v40 = vpop.permute.xlu1 %517  ;;  %v516_v41 = vpop.permute.xlu0 %515 }
  0xa2   : > { %v520_v42 = vsel %vm519_vm7, %v516_v41, %v518_v40  ;;  %v521_v43 = vsel %vm519_vm7, %v518_v40, %v516_v41  ;;  %v542_v9 = vld [vmem:[#allocation2 + $0x28] sm:$0xff]  ;;  %v541_v46 = vld [vmem:[#allocation2 + $0x20] sm:$0xff] }
  0xa3   : > { %v533_v44 = vmul.f32 %v1338_v38, %v520_v42  ;;  %v534_v45 = vmul.f32 %v1341_v39, %v521_v43 }
  0xa5   : > { %535 = vst [vmem:[#allocation2 + $0x40] sm:$0xf] %v533_v44  ;;  %536 = vst [vmem:[#allocation2 + $0x48] sm:$0xf] %v534_v45 }
  0xa8   : > { %v544_v10 = vld [vmem:[#allocation2 + $0x38] sm:$0xff]  ;;  %v543_v47 = vld [vmem:[#allocation2 + $0x30] sm:$0xff] }
  0xa9   : > { %v550_v48 = vpack.c.bf16 %v544_v10, %v542_v9  ;;  %v549_v49 = vpack.c.bf16 %v543_v47, %v541_v46 }
  0xab   : > { %566 = vmatprep.subr.bf16.mxu0 %v550_v48 }
  0xac   : > { %567 = vmatpush1.bf16.msra.mxu0 %v549_v49  ;;  %v546_v50 = vld [vmem:[#allocation2 + $0x48] sm:$0xf]  ;;  %v545_v51 = vld [vmem:[#allocation2 + $0x40] sm:$0xf] }
  0xad   : > { %v552_v54 = vpack.c.bf16 %v546_v50, %v546_v50  ;;  %v551_v55 = vpack.c.bf16 %v545_v51, %v545_v51 }
  0xaf   : > { %1076 = vmatprep.subr.msk.bf16.mxu0 %vm557_vm8, %v552_v54  ;;  %v559_v56 = vsel %vm557_vm8, %v551_v55, 0 }
  0xb0   : > { %569 = vmatpush1.bf16.msra.mxu0 %v559_v56 }
  0xb2   : > { %v608_v58 = vpop.permute.xlu0 %607  ;;  %v615_v60 = vpop.permute.xlu1 %614 }
  0xb3   : > { %1077 = vmatmul.mubr.msk.bf16.vlgmr.msra.gmra.mrb[0].mxu0 %vm553_vm9, %v307_v57 }
  0xb4   : > { %966 = vmatprep.mubr.bf16.mxu0 %v1124_v3 }
 0x186   : > { %v598_v59 = vpop.f32.mrb[0].mxu0 }
 0x187   : > { %v610_v63 = vmul.f32 %v608_v58, %v598_v59  ;;  %v600_v1 = vpop.f32.mrb[1].mxu0 }
 0x188   : > { %v611_v2 = vmul.f32 %v608_v58, %v600_v1  ;;  %v602_v4 = vpop.f32.mrb[2].mxu0 }
 0x189   : > { %v617_v5 = vadd.f32 %v615_v60, %v610_v63  ;;  %v603_v6 = vpop.f32.mrb[3].mxu0 }
 0x18a   : > { %v618_v7 = vadd.f32 %v615_v60, %v611_v2 }
 0x18b   : > { %v619_v11 = vmax.f32 %v617_v5, 0.0 }
 0x18c   : > { %v620_v12 = vmax.f32 %v618_v7, 0.0 }
 0x18d   : > { %673 = vst [vmem:[#allocation3 + $0x20] sm:$0xf] %v619_v11  ;;  %631 = vrot.lane.b32.xlu1 %v619_v11, %s1117_s12  ;;  %v729_v17 = vrot.slane %v619_v11, 4 }
 0x18e   : > { %674 = vst [vmem:[#allocation3 + $0x28] sm:$0xf] %v620_v12  ;;  %633 = vrot.lane.b32.xlu0 %v620_v12, %s1117_s12  ;;  %v730_v3 = vrot.slane %v620_v12, 4 }
 0x18f   : > { %785 = vst [vmem:[#allocation4 + $0x20] sm:$0xf] %v729_v17 }
 0x190   : > { %786 = vst [vmem:[#allocation4 + $0x28] sm:$0xf] %v730_v3 }
 0x191   : > { %657 = vrot.lane.b32.xlu1 %v619_v11, %s1116_s11 }
 0x192   : > { %659 = vrot.lane.b32.xlu0 %v620_v12, %s1116_s11 }
 0x195   : > { %621 = vrot.lane.b32.xlu1 %v619_v11, %s1118_s13 }
 0x196   : > { %623 = vrot.lane.b32.xlu0 %v620_v12, %s1118_s13 }
 0x199   : > { %647 = vrot.lane.b32.xlu1 %v619_v11, %s1119_s14 }
 0x19a   : > { %649 = vrot.lane.b32.xlu0 %v620_v12, %s1119_s14 }
 0x19d   : > { %675 = vrot.lane.b32.xlu1 %v619_v11, %s1120_s15 }
 0x19e   : > { %677 = vrot.lane.b32.xlu0 %v620_v12, %s1120_s15 }
 0x1a1   : > { %701 = vrot.lane.b32.xlu1 %v619_v11, %s1121_s16 }
 0x1a2   : > { %703 = vrot.lane.b32.xlu0 %v620_v12, %s1121_s16 }
 0x1a5   : > { %691 = vrot.lane.b32.xlu1 %v619_v11, %s1122_s17 }
 0x1a6   : > { %693 = vrot.lane.b32.xlu0 %v620_v12, %s1122_s17 }
 0x1a9   : > { %717 = vrot.lane.b32.xlu1 %v619_v11, %s1123_s18 }
 0x1aa   : > { %719 = vrot.lane.b32.xlu0 %v620_v12, %s1123_s18 }
 0x1ad   : > { %743 = vrot.lane.b32.xlu1 %v729_v17, %s1117_s12 }
 0x1ae   : > { %745 = vrot.lane.b32.xlu0 %v730_v3, %s1117_s12 }
 0x1b1   : > { %769 = vrot.lane.b32.xlu1 %v729_v17, %s1116_s11 }
 0x1b2   : > { %771 = vrot.lane.b32.xlu0 %v730_v3, %s1116_s11 }
 0x1b5   : > { %733 = vrot.lane.b32.xlu1 %v729_v17, %s1118_s13 }
 0x1b6   : > { %735 = vrot.lane.b32.xlu0 %v730_v3, %s1118_s13 }
 0x1b9   : > { %759 = vrot.lane.b32.xlu1 %v729_v17, %s1119_s14 }
 0x1ba   : > { %761 = vrot.lane.b32.xlu0 %v730_v3, %s1119_s14 }
 0x1bd   : > { %787 = vrot.lane.b32.xlu1 %v729_v17, %s1120_s15 }
 0x1be   : > { %789 = vrot.lane.b32.xlu0 %v730_v3, %s1120_s15 }
 0x1c1   : > { %813 = vrot.lane.b32.xlu1 %v729_v17, %s1121_s16 }
 0x1c2   : > { %815 = vrot.lane.b32.xlu0 %v730_v3, %s1121_s16 }
 0x1c5   : > { %803 = vrot.lane.b32.xlu1 %v729_v17, %s1122_s17 }
 0x1c6   : > { %805 = vrot.lane.b32.xlu0 %v730_v3, %s1122_s17 }
 0x1c9   : > { %829 = vrot.lane.b32.xlu1 %v729_v17, %s1123_s18 }
 0x1ca   : > { %831 = vrot.lane.b32.xlu0 %v730_v3, %s1123_s18 }
 0x1cd   : > { %977 = vperm.xlu1 %1105, %v311_v18  }
 0x1ce   : > { %990 = vperm.xlu0 %1104, %v312_v19  }
 0x1ff   : > { %v632_v20 = vpop.permute.xlu1 %631 }
 0x200   : > { %v634_v21 = vpop.permute.xlu0 %633 }
 0x201   : > { %v635_v24 = vsel %vm361_vm2, %v632_v20, %v634_v21  ;;  %v636_v25 = vsel %vm361_vm2, %v634_v21, %v632_v20 }
 0x202   : > { %v637_v26 = vmul.f32 %v636_v25, %v1255_v27  ;;  %v638_v29 = vmul.f32 %v635_v24, %v1258_v28 }
 0x203   : > { %v658_v30 = vpop.permute.xlu1 %657 }
 0x204   : > { %v641_v31 = vrot.slane %v637_v26, 4  ;;  %v642_v32 = vrot.slane %v638_v29, 4  ;;  %v660_v35 = vpop.permute.xlu0 %659 }
 0x205   : > { %v661_v36 = vsel %vm411_vm0, %v658_v30, %v660_v35  ;;  %v662_v37 = vsel %vm411_vm0, %v660_v35, %v658_v30 }
 0x206   : > { %645 = vst [vmem:[#allocation3] sm:$0xf0] %v641_v31  ;;  %646 = vst [vmem:[#allocation3 + $0x8] sm:$0xf0] %v642_v32  ;;  %v663_v40 = vmul.f32 %v662_v37, %v1226_v14  ;;  %v664_v41 = vmul.f32 %v661_v36, %v1229_v15 }
 0x207   : > { %v622_v42 = vpop.permute.xlu1 %621 }
 0x208   : > { %v667_v43 = vrot.slane %v663_v40, 4  ;;  %v668_v44 = vrot.slane %v664_v41, 4  ;;  %v624_v45 = vpop.permute.xlu0 %623 }
 0x209   : > { %v625_v9 = vsel %vm339_vm1, %v622_v42, %v624_v45  ;;  %v626_v10 = vsel %vm339_vm1, %v624_v45, %v622_v42 }
 0x20a   : > { %671 = vst [vmem:[#allocation3 + $0x10] sm:$0xf0] %v667_v43  ;;  %672 = vst [vmem:[#allocation3 + $0x18] sm:$0xf0] %v668_v44  ;;  %v627_v46 = vmul.f32 %v626_v10, %v1244_v22  ;;  %v628_v47 = vmul.f32 %v625_v9, %v1247_v23 }
 0x20b   : > { %v648_v48 = vpop.permute.xlu1 %647 }
 0x20c   : > { %629 = vst [vmem:[#allocation3] sm:$0xf] %v627_v46  ;;  %630 = vst [vmem:[#allocation3 + $0x8] sm:$0xf] %v628_v47  ;;  %v650_v49 = vpop.permute.xlu0 %649 }
 0x20d   : > { %v651_v50 = vsel %vm389_vm3, %v648_v48, %v650_v49  ;;  %v652_v51 = vsel %vm389_vm3, %v650_v49, %v648_v48 }
 0x20e   : > { %v653_v54 = vmul.f32 %v652_v51, %v1262_v33  ;;  %v654_v55 = vmul.f32 %v651_v50, %v1265_v34 }
 0x20f   : > { %v676_v56 = vpop.permute.xlu1 %675 }
 0x210   : > { %655 = vst [vmem:[#allocation3 + $0x10] sm:$0xf] %v653_v54  ;;  %656 = vst [vmem:[#allocation3 + $0x18] sm:$0xf] %v654_v55  ;;  %v678_v57 = vpop.permute.xlu0 %677 }
 0x211   : > { %v679_v58 = vsel %vm441_vm4, %v676_v56, %v678_v57  ;;  %v680_v59 = vsel %vm441_vm4, %v678_v57, %v676_v56 }
 0x212   : > { %v681_v60 = vmul.f32 %v679_v58, %v1290_v52  ;;  %v682_v63 = vmul.f32 %v680_v59, %v1293_v53 }
 0x213   : > { %v702_v1 = vpop.permute.xlu1 %701  ;;  %v840_v17 = vld [vmem:[#allocation3 + $0x8] sm:$0xff]  ;;  %v839_v19 = vld [vmem:[#allocation3] sm:$0xff] }
 0x214   : > { %v685_v2 = vrot.slane %v681_v60, 4  ;;  %v686_v4 = vrot.slane %v682_v63, 4  ;;  %v704_v5 = vpop.permute.xlu0 %703 }
 0x215   : > { %v705_v6 = vsel %vm491_vm5, %v702_v1, %v704_v5  ;;  %v706_v7 = vsel %vm491_vm5, %v704_v5, %v702_v1 }
 0x216   : > { %689 = vst [vmem:[#allocation3 + $0x20] sm:$0xf0] %v685_v2  ;;  %690 = vst [vmem:[#allocation3 + $0x28] sm:$0xf0] %v686_v4  ;;  %v707_v11 = vmul.f32 %v705_v6, %v1306_v61  ;;  %v708_v12 = vmul.f32 %v706_v7, %v1309_v62 }
 0x217   : > { %v692_v3 = vpop.permute.xlu1 %691  ;;  %v842_v18 = vld [vmem:[#allocation3 + $0x18] sm:$0xff]  ;;  %v841_v20 = vld [vmem:[#allocation3 + $0x10] sm:$0xff] }
 0x218   : > { %v711_v21 = vrot.slane %v707_v11, 4  ;;  %v712_v24 = vrot.slane %v708_v12, 4  ;;  %v694_v25 = vpop.permute.xlu0 %693  ;;  %v850_v26 = vpack.c.bf16 %v842_v18, %v840_v17  ;;  %v849_v29 = vpack.c.bf16 %v841_v20, %v839_v19  ;;  %v1465_v20 = vld [vmem:[%s1520_s5] sm:$0xf] }
 0x219   : > { %v695_v30 = vsel %vm469_vm6, %v692_v3, %v694_v25  ;;  %v696_v31 = vsel %vm469_vm6, %v694_v25, %v692_v3 }
 0x21a   : > { %715 = vst [vmem:[#allocation3 + $0x30] sm:$0xf0] %v711_v21  ;;  %716 = vst [vmem:[#allocation3 + $0x38] sm:$0xf0] %v712_v24  ;;  %v697_v32 = vmul.f32 %v695_v30, %v1322_v13  ;;  %v698_v35 = vmul.f32 %v696_v31, %v1325_v16  ;;  %864 = vmatprep.subr.bf16.mxu1 %v850_v26 }
 0x21b   : > { %v718_v36 = vpop.permute.xlu1 %717  ;;  %865 = vmatpush1.bf16.msra.mxu1 %v849_v29 }
 0x21c   : > { %699 = vst [vmem:[#allocation3 + $0x30] sm:$0xf] %v697_v32  ;;  %700 = vst [vmem:[#allocation3 + $0x38] sm:$0xf] %v698_v35  ;;  %v720_v37 = vpop.permute.xlu0 %719 }
 0x21d   : > { %v721_v40 = vsel %vm519_vm7, %v718_v36, %v720_v37  ;;  %v722_v41 = vsel %vm519_vm7, %v720_v37, %v718_v36  ;;  %v844_v48 = vld [vmem:[#allocation3 + $0x28] sm:$0xff]  ;;  %v843_v51 = vld [vmem:[#allocation3 + $0x20] sm:$0xff] }
 0x21e   : > { %v723_v42 = vmul.f32 %v721_v40, %v1338_v38  ;;  %v724_v43 = vmul.f32 %v722_v41, %v1341_v39 }
 0x21f   : > { %v744_v44 = vpop.permute.xlu1 %743 }
 0x220   : > { %725 = vst [vmem:[#allocation3 + $0x40] sm:$0xf] %v723_v42  ;;  %726 = vst [vmem:[#allocation3 + $0x48] sm:$0xf] %v724_v43  ;;  %v746_v45 = vpop.permute.xlu0 %745 }
 0x221   : > { %v747_v9 = vsel %vm361_vm2, %v744_v44, %v746_v45  ;;  %v748_v10 = vsel %vm361_vm2, %v746_v45, %v744_v44 }
 0x222   : > { %v749_v46 = vmul.f32 %v748_v10, %v1255_v27  ;;  %v750_v47 = vmul.f32 %v747_v9, %v1258_v28 }
 0x223   : > { %v770_v49 = vpop.permute.xlu1 %769  ;;  %v846_v50 = vld [vmem:[#allocation3 + $0x38] sm:$0xff]  ;;  %v845_v54 = vld [vmem:[#allocation3 + $0x30] sm:$0xff] }
 0x224   : > { %v753_v55 = vrot.slane %v749_v46, 4  ;;  %v754_v56 = vrot.slane %v750_v47, 4  ;;  %v772_v57 = vpop.permute.xlu0 %771  ;;  %v852_v58 = vpack.c.bf16 %v846_v50, %v844_v48  ;;  %v851_v59 = vpack.c.bf16 %v845_v54, %v843_v51 }
 0x225   : > { %v773_v60 = vsel %vm411_vm0, %v770_v49, %v772_v57  ;;  %v774_v63 = vsel %vm411_vm0, %v772_v57, %v770_v49 }
 0x226   : > { %757 = vst [vmem:[#allocation4] sm:$0xf0] %v753_v55  ;;  %758 = vst [vmem:[#allocation4 + $0x8] sm:$0xf0] %v754_v56  ;;  %v775_v27 = vmul.f32 %v774_v63, %v1226_v14  ;;  %v776_v28 = vmul.f32 %v773_v60, %v1229_v15  ;;  %866 = vmatprep.subr.bf16.mxu1 %v852_v58 }
 0x227   : > { %v734_v1 = vpop.permute.xlu1 %733  ;;  %867 = vmatpush1.bf16.msra.mxu1 %v851_v59  ;;  %v848_v2 = vld [vmem:[#allocation3 + $0x48] sm:$0xf]  ;;  %v847_v4 = vld [vmem:[#allocation3 + $0x40] sm:$0xf] }
 0x228   : > { %v779_v5 = vrot.slane %v775_v27, 4  ;;  %v780_v6 = vrot.slane %v776_v28, 4  ;;  %v736_v7 = vpop.permute.xlu0 %735  ;;  %v854_v11 = vpack.c.bf16 %v848_v2, %v848_v2  ;;  %v853_v12 = vpack.c.bf16 %v847_v4, %v847_v4 }
 0x229   : > { %v737_v17 = vsel %vm339_vm1, %v734_v1, %v736_v7  ;;  %v738_v3 = vsel %vm339_vm1, %v736_v7, %v734_v1  ;;  %v1080_v1 = vcombine.low %v1465_v20, %v1465_v20 }
 0x22a   : > { %783 = vst [vmem:[#allocation4 + $0x10] sm:$0xf0] %v779_v5  ;;  %784 = vst [vmem:[#allocation4 + $0x18] sm:$0xf0] %v780_v6  ;;  %v739_v14 = vmul.f32 %v738_v3, %v1244_v22  ;;  %v740_v15 = vmul.f32 %v737_v17, %v1247_v23  ;;  %1078 = vmatprep.subr.msk.bf16.mxu1 %vm557_vm8, %v854_v11  ;;  %v859_v18 = vsel %vm557_vm8, %v853_v12, 0 }
 0x22b   : > { %v760_v19 = vpop.permute.xlu1 %759  ;;  %869 = vmatpush1.bf16.msra.mxu1 %v859_v18 }
 0x22c   : > { %741 = vst [vmem:[#allocation4] sm:$0xf] %v739_v14  ;;  %742 = vst [vmem:[#allocation4 + $0x8] sm:$0xf] %v740_v15  ;;  %v762_v21 = vpop.permute.xlu0 %761 }
 0x22d   : > { %v763_v24 = vsel %vm389_vm3, %v760_v19, %v762_v21  ;;  %v764_v22 = vsel %vm389_vm3, %v762_v21, %v760_v19 }
 0x22e   : > { %v765_v23 = vmul.f32 %v764_v22, %v1262_v33  ;;  %v766_v25 = vmul.f32 %v763_v24, %v1265_v34  ;;  %1079 = vmatmul.mubr.msk.bf16.vlgmr.msra.gmra.mrb[0].mxu1 %vm553_vm9, %v1465_v20 }
 0x22f   : > { %v788_v26 = vpop.permute.xlu1 %787 }
 0x230   : > { %767 = vst [vmem:[#allocation4 + $0x10] sm:$0xf] %v765_v23  ;;  %768 = vst [vmem:[#allocation4 + $0x18] sm:$0xf] %v766_v25  ;;  %v790_v29 = vpop.permute.xlu0 %789 }
 0x231   : > { %v791_v30 = vsel %vm441_vm4, %v788_v26, %v790_v29  ;;  %v792_v31 = vsel %vm441_vm4, %v790_v29, %v788_v26  ;;  %v996_v29 = vcombine.high %v1186_v0, %v1186_v0 }
 0x232   : > { %v793_v32 = vmul.f32 %v791_v30, %v1290_v52  ;;  %v794_v35 = vmul.f32 %v792_v31, %v1293_v53 }
 0x233   : > { %v814_v33 = vpop.permute.xlu1 %813  ;;  %v906_v44 = vld [vmem:[#allocation4 + $0x8] sm:$0xff]  ;;  %v905_v53 = vld [vmem:[#allocation4] sm:$0xff] }
 0x234   : > { %v797_v36 = vrot.slane %v793_v32, 4  ;;  %v798_v34 = vrot.slane %v794_v35, 4  ;;  %v816_v37 = vpop.permute.xlu0 %815 }
 0x235   : > { %v817_v40 = vsel %vm491_vm5, %v814_v33, %v816_v37  ;;  %v818_v41 = vsel %vm491_vm5, %v816_v37, %v814_v33 }
 0x236   : > { %801 = vst [vmem:[#allocation4 + $0x20] sm:$0xf0] %v797_v36  ;;  %802 = vst [vmem:[#allocation4 + $0x28] sm:$0xf0] %v798_v34  ;;  %v819_v42 = vmul.f32 %v817_v40, %v1306_v61  ;;  %v820_v43 = vmul.f32 %v818_v41, %v1309_v62 }
 0x237   : > { %v804_v52 = vpop.permute.xlu1 %803  ;;  %v908_v45 = vld [vmem:[#allocation4 + $0x18] sm:$0xff]  ;;  %v907_v9 = vld [vmem:[#allocation4 + $0x10] sm:$0xff] }
 0x238   : > { %v823_v10 = vrot.slane %v819_v42, 4  ;;  %v824_v46 = vrot.slane %v820_v43, 4  ;;  %v806_v47 = vpop.permute.xlu0 %805  ;;  %v916_v48 = vpack.c.bf16 %v908_v45, %v906_v44  ;;  %v915_v49 = vpack.c.bf16 %v907_v9, %v905_v53 }
 0x239   : > { %v807_v50 = vsel %vm469_vm6, %v804_v52, %v806_v47  ;;  %v808_v51 = vsel %vm469_vm6, %v806_v47, %v804_v52 }
 0x23a   : > { %827 = vst [vmem:[#allocation4 + $0x30] sm:$0xf0] %v823_v10  ;;  %828 = vst [vmem:[#allocation4 + $0x38] sm:$0xf0] %v824_v46  ;;  %v809_v61 = vmul.f32 %v807_v50, %v1322_v13  ;;  %v810_v62 = vmul.f32 %v808_v51, %v1325_v16  ;;  %934 = vmatprep.subr.bf16.mxu0 %v916_v48 }
 0x23b   : > { %v830_v54 = vpop.permute.xlu1 %829  ;;  %935 = vmatpush1.bf16.msra.mxu0 %v915_v49 }
 0x23c   : > { %811 = vst [vmem:[#allocation4 + $0x30] sm:$0xf] %v809_v61  ;;  %812 = vst [vmem:[#allocation4 + $0x38] sm:$0xf] %v810_v62  ;;  %v832_v55 = vpop.permute.xlu0 %831 }
 0x23d   : > { %v833_v56 = vsel %vm519_vm7, %v830_v54, %v832_v55  ;;  %v834_v57 = vsel %vm519_vm7, %v832_v55, %v830_v54  ;;  %v910_v13 = vld [vmem:[#allocation4 + $0x28] sm:$0xff]  ;;  %v909_v60 = vld [vmem:[#allocation4 + $0x20] sm:$0xff] }
 0x23e   : > { %v835_v58 = vmul.f32 %v833_v56, %v1338_v38  ;;  %v836_v59 = vmul.f32 %v834_v57, %v1341_v39  ;;  %v924_v38 = vrot.slane %v1080_v1, 2 }
 0x240   : > { %837 = vst [vmem:[#allocation4 + $0x40] sm:$0xf] %v835_v58  ;;  %838 = vst [vmem:[#allocation4 + $0x48] sm:$0xf] %v836_v59 }
 0x243   : > { %v912_v16 = vld [vmem:[#allocation4 + $0x38] sm:$0xff]  ;;  %v911_v63 = vld [vmem:[#allocation4 + $0x30] sm:$0xff] }
 0x244   : > { %v918_v27 = vpack.c.bf16 %v912_v16, %v910_v13  ;;  %v917_v28 = vpack.c.bf16 %v911_v63, %v909_v60 }
 0x246   : > { %936 = vmatprep.subr.bf16.mxu0 %v918_v27 }
 0x247   : > { %937 = vmatpush1.bf16.msra.mxu0 %v917_v28  ;;  %v914_v2 = vld [vmem:[#allocation4 + $0x48] sm:$0xf]  ;;  %v913_v8 = vld [vmem:[#allocation4 + $0x40] sm:$0xf] }
 0x248   : > { %v920_v4 = vpack.c.bf16 %v914_v2, %v914_v2  ;;  %v919_v5 = vpack.c.bf16 %v913_v8, %v913_v8 }
 0x24a   : > { %1081 = vmatprep.subr.msk.bf16.mxu0 %vm557_vm8, %v920_v4  ;;  %v929_v39 = vsel %vm557_vm8, %v919_v5, 0 }
 0x24b   : > { %939 = vmatpush1.bf16.msra.mxu0 %v929_v39 }
 0x24c   : > { %v978_v17 = vpop.permute.xlu1 %977 }
 0x24d   : > { %v982_v3 = vrot.slane %v978_v17, 4  ;;  %v991_v25 = vpop.permute.xlu0 %990 }
 0x24e   : > { %1082 = vmatmul.mubr.msk.bf16.vlgmr.msra.gmra.mrb[4].mxu0 %vm553_vm9, %v924_v38 }
 0x301   : > { %v898_v6 = vpop.f32.mrb[0].mxu1 }
 0x302   : > { %v900_v7 = vpop.f32.mrb[1].mxu1  ;;  %v980_v15 = vmul.f32 %v978_v17, %v898_v6 }
 0x303   : > { %v902_v11 = vpop.f32.mrb[2].mxu1  ;;  %v981_v20 = vmul.f32 %v978_v17, %v900_v7 }
 0x304   : > { %v903_v12 = vpop.f32.mrb[3].mxu1 }
 0x321   : > { %v968_v14 = vpop.f32.mrb[4].mxu0 }
 0x322   : > { %v984_v18 = vmul.f32 %v982_v3, %v968_v14  ;;  %v970_v19 = vpop.f32.mrb[5].mxu0 }
 0x323   : > { %v985_v21 = vmul.f32 %v982_v3, %v970_v19  ;;  %v972_v24 = vpop.f32.mrb[6].mxu0 }
 0x324   : > { %v986_v22 = vadd.f32 %v984_v18, %v980_v15  ;;  %v973_v23 = vpop.f32.mrb[7].mxu0 }
 0x325   : > { %v987_v26 = vadd.f32 %v985_v21, %v981_v20 }
 0x326   : > { %v993_v30 = vadd.f32 %v991_v25, %v986_v22 }
 0x327   : > { %v994_v31 = vadd.f32 %v991_v25, %v987_v26 }
 0x328   : > { %v998_v32 = vadd.f32 %v993_v30, %v1186_v0 }
 0x329   : > { %v999_v35 = vadd.f32 %v996_v29, %v994_v31 }
 0x32b   : > { %v1002_v33 = vcombine.low %v998_v32, %v999_v35 }
 0x32d   : > { %1004 = vst [vmem:[%s305_s19] sm:$0xff] %v1002_v33 }
 0x32e PF: > { %s18_s27 = sadd.s32 1, %s1114_s27  }
 0x32f   : > { %p15_p4 = scmp.ge.s32.totalorder %s18_s27, 4  }
 0x331   :  { %17 = sbr.rel (!%p15_p4) target bundleno = 1 (0x1), region = 89 }

</bundles_post_ra>
